<compile_context>
chip_gen: v5e
topology: v5e:2x2
jax: 0.10.0
libtpu: 0.0.40
codegen_flags: <defaults>
</compile_context>

<pallas_src>
import math

import jax
import jax.numpy as jnp
from jax.experimental import pallas as pl
from jax.experimental.pallas import tpu as pltpu

EPS = 1e-6
MIN_GRID_STEPS = 4        # guarantee megacore sharding / pipeline overlap
MAX_FOLDED_WIDTH = 4096   # cap on lane width when folding rows into lanes


# ---------------------------------------------------------------------------
# kernels
# ---------------------------------------------------------------------------

def _plain_kernel(x_ref, gamma_ref, beta_ref, o_ref):
    """Standard path: one block row == one LayerNorm row (lane dim = features)."""
    x = x_ref[...].astype(jnp.float32)                       # (tile_rows, F)
    n = x.shape[-1]
    mean = jnp.mean(x, axis=-1, keepdims=True)
    diff = x - mean
    # unbiased variance (Bessel's correction) to match torch.std default
    var = jnp.sum(diff * diff, axis=-1, keepdims=True) / max(1, n - 1)
    # per-row reciprocal of (std + eps): (tile_rows, 1) values, VPU-cheap
    inv = pl.reciprocal(jnp.sqrt(var) + EPS, approx=False)
    gamma = gamma_ref[...].astype(jnp.float32)                # (1, F)
    beta = beta_ref[...].astype(jnp.float32)                  # (1, F)
    o_ref[...] = ((diff * inv) * gamma + beta).astype(o_ref.dtype)


def _make_folded_kernel(features):
    """Lane-dense path: k original rows folded into each block row (width k*F).

    Per-segment (i.e. per original row) sums are computed with 0/1 indicator
    matmuls so no in-kernel reshape/transpose is needed; Precision.HIGHEST
    keeps the reductions and the broadcast-back at f32 accuracy (the MXU is
    idle in this HBM-bound kernel, so the extra passes are free).
    """
    inv_n = 1.0 / features
    inv_nm1 = 1.0 / max(1, features - 1)
    hp = jax.lax.Precision.HIGHEST

    def kernel(x_ref, gamma_ref, beta_ref, seg_ref, segt_ref, o_ref):
        x = x_ref[...].astype(jnp.float32)          # (tr, k*F) lane-dense
        seg = seg_ref[...]                          # (k*F, k) 0/1 indicator
        seg_t = segt_ref[...]                       # (k, k*F)
        gamma = gamma_ref[...].astype(jnp.float32)  # (1, k*F) (tiled)
        beta = beta_ref[...].astype(jnp.float32)    # (1, k*F) (tiled)

        s1 = jnp.dot(x, seg, precision=hp,
                     preferred_element_type=jnp.float32)            # (tr, k)
        mean = s1 * inv_n
        mean_b = jnp.dot(mean, seg_t, precision=hp,
                         preferred_element_type=jnp.float32)        # (tr, k*F)
        diff = x - mean_b
        s2 = jnp.dot(diff * diff, seg, precision=hp,
                     preferred_element_type=jnp.float32)            # (tr, k)
        inv = pl.reciprocal(jnp.sqrt(s2 * inv_nm1) + EPS, approx=False)
        inv_b = jnp.dot(inv, seg_t, precision=hp,
                        preferred_element_type=jnp.float32)         # (tr, k*F)
        o_ref[...] = ((diff * inv_b) * gamma + beta).astype(o_ref.dtype)

    return kernel


# ---------------------------------------------------------------------------
# tiling / VMEM configuration
# ---------------------------------------------------------------------------

def _vmem_config():
    """Return (tile_budget_bytes, vmem_limit_bytes, small_vmem), generation aware."""
    cap = None
    try:
        cap = getattr(pltpu.get_tpu_info(), "vmem_capacity_bytes", None)
    except Exception:
        cap = None
    if cap is None:
        cap = 64 * 1024 * 1024                     # conservative default
    if cap <= 64 * 1024 * 1024:
        # v7x-class: 64 MiB VMEM per TensorCore -> smaller tiles, modest limit
        return 16 * 1024 * 1024, 40 * 1024 * 1024, True
    # v5e / v6e: 128 MiB physical VMEM -> big byte-capped tiles
    return 48 * 1024 * 1024, 96 * 1024 * 1024, False


def _pick_tile_rows(n_rows, lane_width, itemsize, row_align, budget_bytes):
    # Per block row in VMEM: 2x double-buffered input + output tiles, plus the
    # compiler-managed f32 working set inside the kernel (x upcast, diff, y).
    bytes_per_row = 4 * lane_width * itemsize + 3 * lane_width * 4
    tile = max(row_align, budget_bytes // max(1, bytes_per_row))
    tile = max(row_align, (tile // row_align) * row_align)
    # Keep >= MIN_GRID_STEPS grid steps when rows allow, so the 'parallel' row
    # axis can shard across both v7x TensorCores and the pipeline has steps
    # to overlap.
    if n_rows >= MIN_GRID_STEPS * row_align:
        cap = max(row_align, (n_rows // MIN_GRID_STEPS // row_align) * row_align)
        tile = min(tile, cap)
    if tile >= n_rows:
        return n_rows   # single block == full array (no alignment constraint)
    return tile


# ---------------------------------------------------------------------------
# launchers
# ---------------------------------------------------------------------------

def _launch_plain(x2, gamma, beta, row_align, budget, vmem_limit, small_vmem):
    rows, features = x2.shape
    itemsize = jnp.dtype(x2.dtype).itemsize
    tile_rows = _pick_tile_rows(rows, features, itemsize, row_align, budget)
    grid = (pl.cdiv(rows, tile_rows),)

    x_spec_kwargs = {}
    if small_vmem and grid[0] >= 3:
        # small tiles (v7x) -> deeper input pipelining hides DMA issue latency
        x_spec_kwargs["pipeline_mode"] = pl.Buffered(3)

    return pl.pallas_call(
        _plain_kernel,
        out_shape=jax.ShapeDtypeStruct((rows, features), x2.dtype),
        grid_spec=pltpu.PrefetchScalarGridSpec(
            num_scalar_prefetch=0,
            grid=grid,
            in_specs=[
                pl.BlockSpec((tile_rows, features), lambda i: (i, 0),
                             **x_spec_kwargs),
                pl.BlockSpec((1, features), lambda i: (0, 0)),
                pl.BlockSpec((1, features), lambda i: (0, 0)),
            ],
            out_specs=pl.BlockSpec((tile_rows, features), lambda i: (i, 0)),
        ),
        compiler_params=pltpu.CompilerParams(
            dimension_semantics=("parallel",),
            vmem_limit_bytes=vmem_limit,
        ),
    )(x2, gamma.reshape(1, features), beta.reshape(1, features))


def _launch_folded(x2, gamma, beta, k, row_align, budget, vmem_limit, small_vmem):
    rows, features = x2.shape
    width = k * features
    n_rows = rows // k
    itemsize = jnp.dtype(x2.dtype).itemsize

    xf = x2.reshape(n_rows, width)                       # lane-dense layout
    gamma_t = jnp.tile(gamma.reshape(1, features), (1, k))   # (1, k*F)
    beta_t = jnp.tile(beta.reshape(1, features), (1, k))     # (1, k*F)
    # 0/1 indicator: column j selects lanes belonging to original row j of the group
    seg = (jnp.arange(width, dtype=jnp.int32)[:, None] // features
           == jnp.arange(k, dtype=jnp.int32)[None, :]).astype(jnp.float32)
    seg_t = jnp.transpose(seg)

    tile_rows = _pick_tile_rows(n_rows, width, itemsize, row_align, budget)
    grid = (pl.cdiv(n_rows, tile_rows),)

    x_spec_kwargs = {}
    if small_vmem and grid[0] >= 3:
        x_spec_kwargs["pipeline_mode"] = pl.Buffered(3)

    out = pl.pallas_call(
        _make_folded_kernel(features),
        out_shape=jax.ShapeDtypeStruct((n_rows, width), x2.dtype),
        grid_spec=pltpu.PrefetchScalarGridSpec(
            num_scalar_prefetch=0,
            grid=grid,
            in_specs=[
                pl.BlockSpec((tile_rows, width), lambda i: (i, 0),
                             **x_spec_kwargs),
                pl.BlockSpec((1, width), lambda i: (0, 0)),
                pl.BlockSpec((1, width), lambda i: (0, 0)),
                pl.BlockSpec((width, k), lambda i: (0, 0)),
                pl.BlockSpec((k, width), lambda i: (0, 0)),
            ],
            out_specs=pl.BlockSpec((tile_rows, width), lambda i: (i, 0)),
        ),
        compiler_params=pltpu.CompilerParams(
            dimension_semantics=("parallel",),
            vmem_limit_bytes=vmem_limit,
        ),
    )(xf, gamma_t, beta_t, seg, seg_t)
    return out.reshape(rows, features)


# ---------------------------------------------------------------------------
# public entry point
# ---------------------------------------------------------------------------

def layer_norm(x, gamma, beta):
    """x: (..., features). gamma/beta: (features,)."""
    orig_shape = x.shape
    features = orig_shape[-1]
    x2 = x.reshape(-1, features)
    rows = x2.shape[0]

    itemsize = jnp.dtype(x.dtype).itemsize
    # sublane packing: f32 -> 8, bf16 -> 16, int8/fp8 -> 32
    row_align = {4: 8, 2: 16, 1: 32}.get(itemsize, 8)
    budget, vmem_limit, small_vmem = _vmem_config()

    # Lane-density: a feature dim that is not a multiple of 128 lowers to
    # masked vst.msk partial stores and wastes vreg lanes in every DMA.
    # Fold k consecutive rows into the lane dimension when that's cheap.
    k = 1
    if features % 128 != 0:
        k = 128 // math.gcd(features, 128)
        if rows % k != 0 or k * features > MAX_FOLDED_WIDTH:
            k = 1  # fall back to the plain (possibly lane-sparse) path

    if k > 1:
        out = _launch_folded(x2, gamma, beta, k, row_align, budget,
                             vmem_limit, small_vmem)
    else:
        out = _launch_plain(x2, gamma, beta, row_align, budget,
                            vmem_limit, small_vmem)
    return out.reshape(orig_shape)


# ---------------------------------------------------------------------------
# demo / self-check
# ---------------------------------------------------------------------------

if __name__ == "__main__":
    def reference(x, gamma, beta):
        n = x.shape[-1]
        mean = jnp.mean(x, axis=-1, keepdims=True)
        std = jnp.sqrt(jnp.sum((x - mean) ** 2, axis=-1, keepdims=True) / (n - 1))
        return gamma * (x - mean) / (std + EPS) + beta

    key = jax.random.PRNGKey(0)

    # Case 1: module-sized input (hidden=32 exercises the lane-dense folded
    # path, since 32 is not a multiple of 128).
    batch, seq, hidden = 2, 8, 32
    x = jax.random.normal(key, (batch, seq, hidden), dtype=jnp.float32)
    gamma = jnp.ones((hidden,), dtype=jnp.float32)   # nn.Parameter(torch.ones)
    beta = jnp.zeros((hidden,), dtype=jnp.float32)   # nn.Parameter(torch.zeros)
    out = jax.block_until_ready(layer_norm(x, gamma, beta))
    assert jnp.allclose(out, reference(x, gamma, beta), atol=1e-5, rtol=1e-5)

    # Case 2: lane-aligned feature dim (exercises the plain path).
    hidden2 = 128
    x2 = jax.random.normal(jax.random.PRNGKey(1), (batch, seq, hidden2),
                           dtype=jnp.float32)
    gamma2 = jnp.ones((hidden2,), dtype=jnp.float32)
    beta2 = jnp.zeros((hidden2,), dtype=jnp.float32)
    out2 = jax.block_until_ready(layer_norm(x2, gamma2, beta2))
    assert jnp.allclose(out2, reference(x2, gamma2, beta2), atol=1e-5, rtol=1e-5)

    print("KERNEL_OK")
</pallas_src>

<mosaic_0001>
module attributes {stable_mosaic.version = 11 : i64} {
  func.func @kernel(%arg0: i32, %arg1: memref<4x128xf32, #tpu.memory_space<vmem>>, %arg2: memref<1x128xf32, #tpu.memory_space<vmem>>, %arg3: memref<1x128xf32, #tpu.memory_space<vmem>>, %arg4: memref<128x4xf32, #tpu.memory_space<vmem>>, %arg5: memref<4x128xf32, #tpu.memory_space<vmem>>, %arg6: memref<4x128xf32, #tpu.memory_space<vmem>>) attributes {dimension_semantics = [#tpu.dimension_semantics<parallel>], iteration_bounds = array<i64: 1>, scalar_prefetch = 0 : i64, scratch_operands = 0 : i64, tpu.core_type = #tpu.core_type<tc>, window_params = [{transform_indices = @transform_0, window_bounds = array<i64: 4, 128>}, {pipeline_mode = #tpu.pipeline_mode<synchronous>, transform_indices = @transform_1, window_bounds = array<i64: 1, 128>}, {pipeline_mode = #tpu.pipeline_mode<synchronous>, transform_indices = @transform_2, window_bounds = array<i64: 1, 128>}, {pipeline_mode = #tpu.pipeline_mode<synchronous>, transform_indices = @transform_3, window_bounds = array<i64: 128, 4>}, {pipeline_mode = #tpu.pipeline_mode<synchronous>, transform_indices = @transform_4, window_bounds = array<i64: 4, 128>}, {transform_indices = @transform_5, window_bounds = array<i64: 4, 128>}]} {
    %c0 = arith.constant 0 : index
    %c0_0 = arith.constant 0 : index
    %0 = vector.load %arg1[%c0, %c0_0] : memref<4x128xf32, #tpu.memory_space<vmem>>, vector<4x128xf32>
    %c0_1 = arith.constant 0 : index
    %c0_2 = arith.constant 0 : index
    %1 = vector.load %arg4[%c0_1, %c0_2] : memref<128x4xf32, #tpu.memory_space<vmem>>, vector<128x4xf32>
    %c0_3 = arith.constant 0 : index
    %c0_4 = arith.constant 0 : index
    %2 = vector.load %arg5[%c0_3, %c0_4] : memref<4x128xf32, #tpu.memory_space<vmem>>, vector<4x128xf32>
    %c0_5 = arith.constant 0 : index
    %c0_6 = arith.constant 0 : index
    %3 = vector.load %arg2[%c0_5, %c0_6] : memref<1x128xf32, #tpu.memory_space<vmem>>, vector<1x128xf32>
    %c0_7 = arith.constant 0 : index
    %c0_8 = arith.constant 0 : index
    %4 = vector.load %arg3[%c0_7, %c0_8] : memref<1x128xf32, #tpu.memory_space<vmem>>, vector<1x128xf32>
    %cst = arith.constant dense<0.000000e+00> : vector<4x4xf32>
    %5 = tpu.matmul %0, %1, %cst {dimension_numbers = #tpu.dot_dimension_numbers<[1], [0], [0], [1], [0, 0, 1, 1], [], []>, precision = #tpu.contract_precision<fp32>} : vector<4x128xf32>, vector<128x4xf32>, vector<4x4xf32> -> vector<4x4xf32>
    %cst_9 = arith.constant 3.125000e-02 : f32
    %6 = vector.broadcast %cst_9 : f32 to vector<4x4xf32>
    %7 = arith.mulf %5, %6 : vector<4x4xf32>
    %cst_10 = arith.constant dense<0.000000e+00> : vector<4x128xf32>
    %8 = tpu.matmul %7, %2, %cst_10 {dimension_numbers = #tpu.dot_dimension_numbers<[1], [0], [0], [1], [0, 0, 1, 1], [], []>, precision = #tpu.contract_precision<fp32>} : vector<4x4xf32>, vector<4x128xf32>, vector<4x128xf32> -> vector<4x128xf32>
    %9 = arith.subf %0, %8 : vector<4x128xf32>
    %10 = arith.mulf %9, %9 : vector<4x128xf32>
    %cst_11 = arith.constant dense<0.000000e+00> : vector<4x4xf32>
    %11 = tpu.matmul %10, %1, %cst_11 {dimension_numbers = #tpu.dot_dimension_numbers<[1], [0], [0], [1], [0, 0, 1, 1], [], []>, precision = #tpu.contract_precision<fp32>} : vector<4x128xf32>, vector<128x4xf32>, vector<4x4xf32> -> vector<4x4xf32>
    %cst_12 = arith.constant 0.0322580636 : f32
    %12 = vector.broadcast %cst_12 : f32 to vector<4x4xf32>
    %13 = arith.mulf %11, %12 : vector<4x4xf32>
    %14 = math.sqrt %13 : vector<4x4xf32>
    %cst_13 = arith.constant 9.99999997E-7 : f32
    %15 = vector.broadcast %cst_13 : f32 to vector<4x4xf32>
    %16 = arith.addf %14, %15 : vector<4x4xf32>
    %17 = tpu.reciprocal %16 : vector<4x4xf32> -> vector<4x4xf32>
    %cst_14 = arith.constant dense<0.000000e+00> : vector<4x128xf32>
    %18 = tpu.matmul %17, %2, %cst_14 {dimension_numbers = #tpu.dot_dimension_numbers<[1], [0], [0], [1], [0, 0, 1, 1], [], []>, precision = #tpu.contract_precision<fp32>} : vector<4x4xf32>, vector<4x128xf32>, vector<4x128xf32> -> vector<4x128xf32>
    %19 = arith.mulf %9, %18 : vector<4x128xf32>
    %20 = vector.broadcast %3 : vector<1x128xf32> to vector<4x128xf32>
    %21 = arith.mulf %19, %20 : vector<4x128xf32>
    %22 = vector.broadcast %4 : vector<1x128xf32> to vector<4x128xf32>
    %23 = arith.addf %21, %22 : vector<4x128xf32>
    %c0_15 = arith.constant 0 : index
    %c0_16 = arith.constant 0 : index
    %24 = vector.load %arg6[%c0_15, %c0_16] : memref<4x128xf32, #tpu.memory_space<vmem>>, vector<4x128xf32>
    tpu.vector_store %arg6[%c0_15, %c0_16], %23 {strides = array<i32>} : memref<4x128xf32, #tpu.memory_space<vmem>>, vector<4x128xf32>,
    return
  }
  func.func @transform_0(%arg0: i32) -> (i32, i32) {
    %c0_i32 = arith.constant 0 : i32
    %c0_i32_0 = arith.constant 0 : i32
    return %arg0, %c0_i32 : i32, i32
  }
  func.func @transform_1(%arg0: i32) -> (i32, i32) {
    %c0_i32 = arith.constant 0 : i32
    %c0_i32_0 = arith.constant 0 : i32
    %c0_i32_1 = arith.constant 0 : i32
    return %c0_i32, %c0_i32_0 : i32, i32
  }
  func.func @transform_2(%arg0: i32) -> (i32, i32) {
    %c0_i32 = arith.constant 0 : i32
    %c0_i32_0 = arith.constant 0 : i32
    %c0_i32_1 = arith.constant 0 : i32
    return %c0_i32, %c0_i32_0 : i32, i32
  }
  func.func @transform_3(%arg0: i32) -> (i32, i32) {
    %c0_i32 = arith.constant 0 : i32
    %c0_i32_0 = arith.constant 0 : i32
    %c0_i32_1 = arith.constant 0 : i32
    return %c0_i32, %c0_i32_0 : i32, i32
  }
  func.func @transform_4(%arg0: i32) -> (i32, i32) {
    %c0_i32 = arith.constant 0 : i32
    %c0_i32_0 = arith.constant 0 : i32
    %c0_i32_1 = arith.constant 0 : i32
    return %c0_i32, %c0_i32_0 : i32, i32
  }
  func.func @transform_5(%arg0: i32) -> (i32, i32) {
    %c0_i32 = arith.constant 0 : i32
    %c0_i32_0 = arith.constant 0 : i32
    return %arg0, %c0_i32 : i32, i32
  }
}

</mosaic_0001>

<bundles_post_ra>
// kernel: tpu_custom_call.1
= control target key start
LH: loop header
LB: loop body
LE: loop exit
PB: predicated region body
PF: predicated region fallthrough
CT: control target
= control target key end

     0   :  { %s1632_s0 = inlined_call_operand.vmem [shape: f32[4,128], index: 0, kind: input, shape index: {}]   ;;  %s1633_s1 = inlined_call_operand.vmem [shape: f32[1,128], index: 1, kind: input, shape index: {}]   ;;  %s1634_s2 = inlined_call_operand.vmem [shape: f32[1,128], index: 2, kind: input, shape index: {}]   ;;  %s1635_s3 = inlined_call_operand.vmem [shape: f32[128,4], index: 3, kind: input, shape index: {}]   ;;  %s1636_s4 = inlined_call_operand.vmem [shape: f32[4,128], index: 4, kind: input, shape index: {}]   ;;  %s1637_s5 = inlined_call_operand.hbm [shape: f32[4,128], index: 5, kind: output, shape index: {}]  }
   0x1   :  { %v37_v0 = vld [vmem:[%s1635_s3 + $0x78] sm:$0xff]  ;;  %v36_v1 = vld [vmem:[%s1635_s3 + $0x70] sm:$0xff]  ;;  %v35_v2 = vld [vmem:[%s1635_s3 + $0x68] sm:$0xff] }
   0x2   :  { %v1156_v3 = vand.u32 4294901760, %v37_v0  ;;  %v1158_v4 = vand.u32 4294901760, %v36_v1  ;;  %v1160_v5 = vand.u32 4294901760, %v35_v2  ;;  %v34_v6 = vld [vmem:[%s1635_s3 + $0x60] sm:$0xff]  ;;  %v33_v7 = vld [vmem:[%s1635_s3 + $0x58] sm:$0xff]  ;;  %v32_v8 = vld [vmem:[%s1635_s3 + $0x50] sm:$0xff] }
   0x3   :  { %v1171_v9 = vand.u32 4294901760, %v34_v6  ;;  %v1173_v10 = vand.u32 4294901760, %v33_v7  ;;  %v1175_v11 = vand.u32 4294901760, %v32_v8  ;;  %v31_v12 = vld [vmem:[%s1635_s3 + $0x48] sm:$0xff]  ;;  %v30_v13 = vld [vmem:[%s1635_s3 + $0x40] sm:$0xff]  ;;  %v29_v18 = vld [vmem:[%s1635_s3 + $0x38] sm:$0xff] }
   0x4   :  { %42 = vmatpush.msra.mxu0 %v1156_v3  ;;  %v1185_v14 = vsub.f32 %v37_v0, %v1156_v3  ;;  %v1188_v15 = vsub.f32 %v36_v1, %v1158_v4  ;;  %v1191_v16 = vsub.f32 %v35_v2, %v1160_v5  ;;  %v1193_v17 = vand.u32 4294901760, %v31_v12  ;;  %238 = vmatpush.msra.mxu3 %v1156_v3  ;;  %v28_v26 = vld [vmem:[%s1635_s3 + $0x30] sm:$0xff] }
   0x5   :  { %v1200_v19 = vsub.f32 %v34_v6, %v1171_v9  ;;  %v1203_v20 = vsub.f32 %v33_v7, %v1173_v10  ;;  %v1206_v21 = vsub.f32 %v32_v8, %v1175_v11  ;;  %v1218_v25 = vand.u32 4294901760, %v30_v13 }
   0x6   :  { %44 = vmatpush.msra.mxu0 %v1158_v4  ;;  %v1210_v22 = vand.u32 4294901760, %v1185_v14  ;;  %v1213_v23 = vand.u32 4294901760, %v1188_v15  ;;  %v1216_v24 = vand.u32 4294901760, %v1191_v16  ;;  %185 = vmatpush.msra.mxu2 %v1185_v14  ;;  %v1227_v28 = vand.u32 4294901760, %v29_v18 }
   0x7   :  { %v1225_v27 = vand.u32 4294901760, %v1200_v19  ;;  %v1230_v29 = vsub.f32 %v31_v12, %v1193_v17  ;;  %240 = vmatpush.msra.mxu3 %v1158_v4 }
   0x8   :  { %10 = vsyncpa [#allocation3], 0  ;;  %46 = vmatpush.msra.mxu0 %v1160_v5  ;;  %v85_v30 = vsub.f32 %v1185_v14, %v1210_v22  ;;  %v91_v31 = vsub.f32 %v1188_v15, %v1213_v23  ;;  %v97_v32 = vsub.f32 %v1191_v16, %v1216_v24  ;;  %v1241_v33 = vand.u32 4294901760, %v1203_v20  ;;  %188 = vmatpush.msra.mxu2 %v1188_v15  ;;  %v27_v36 = vld [vmem:[%s1635_s3 + $0x28] sm:$0xff]  ;;  %v26_v42 = vld [vmem:[%s1635_s3 + $0x20] sm:$0xff]  ;;  %s1116_s30 = smov [#allocation2]  }
   0x9   :  { %v1245_v34 = vand.u32 4294901760, %v1206_v21  ;;  %v1247_v35 = vand.u32 4294901760, %v28_v26  ;;  %242 = vmatpush.msra.mxu3 %v1160_v5  ;;  %v103_v39 = vsub.f32 %v1200_v19, %v1225_v27  ;;  %v1261_v40 = vsub.f32 %v30_v13, %v1218_v25  ;;  %v25_v47 = vld [vmem:[%s1635_s3 + $0x18] sm:$0xff]  ;;  %v24_v55 = vld [vmem:[%s1635_s3 + $0x10] sm:$0xff]  ;;  %v23_v60 = vld [vmem:[%s1635_s3 + $0x8] sm:$0xff]  ;;  %s1072_s6 = sshll.u32 %s1116_s30, 4  ;;  %s1073_s6 = int_to_ptr.vmem [resolvable:$true] %s1072_s6 }
   0xa   :  { %v1253_v37 = vand.u32 4294901760, %v85_v30  ;;  %48 = vmatpush.msra.mxu0 %v1171_v9  ;;  %v1256_v38 = vand.u32 4294901760, %v91_v31  ;;  %191 = vmatpush.msra.mxu2 %v1191_v16  ;;  %v1265_v41 = vand.u32 4294901760, %v1230_v29  ;;  %v1273_v43 = vand.u32 4294901760, %v97_v32  ;;  %v22_v1 = vld [vmem:[%s1635_s3] sm:$0xff]  ;;  %s1074_s9 = sshll.u32 %s1637_s5, 4  ;;  %s1075_s9 = int_to_ptr.hbm [resolvable:$true] %s1074_s9 }
   0xb   :  { %244 = vmatpush.msra.mxu3 %v1171_v9  ;;  %v109_v44 = vsub.f32 %v1203_v20, %v1241_v33  ;;  %v1277_v45 = vand.u32 4294901760, %v27_v36  ;;  %v1280_v46 = vsub.f32 %v29_v18, %v1227_v28  ;;  %v115_v48 = vsub.f32 %v1206_v21, %v1245_v34  ;;  %v1352_v7 = vld [vmem:[%s1632_s0] sm:$0xf] }
   0xc   :  { %87 = vmatpush.msra.mxu1 %v1253_v37  ;;  %50 = vmatpush.msra.mxu0 %v1173_v10  ;;  %v1291_v49 = vand.u32 4294901760, %v103_v39  ;;  %v1294_v50 = vand.u32 4294901760, %v1261_v40  ;;  %v1296_v51 = vand.u32 4294901760, %v26_v42  ;;  %v1299_v52 = vsub.f32 %v28_v26, %v1247_v35  ;;  %1649 = vst [vmem:[#allocation8_spill] sm:$0xff] %v1352_v7 }
   0xd   :  { %194 = vmatpush.msra.mxu2 %v1200_v19  ;;  %246 = vmatpush.msra.mxu3 %v1173_v10  ;;  %v121_v53 = vsub.f32 %v1230_v29, %v1265_v41  ;;  %v1303_v54 = vand.u32 4294901760, %v25_v47  ;;  %v1312_v56 = vand.u32 4294901760, %v109_v44  ;;  %v1315_v57 = vand.u32 4294901760, %v1280_v46 }
   0xe   :  { %93 = vmatpush.msra.mxu1 %v1256_v38  ;;  %52 = vmatpush.msra.mxu0 %v1175_v11  ;;  %v1318_v58 = vsub.f32 %v27_v36, %v1277_v45  ;;  %v1320_v59 = vand.u32 4294901760, %v115_v48  ;;  %v127_v61 = vsub.f32 %v1261_v40, %v1294_v50  ;;  %v1332_v62 = vand.u32 4294901760, %v1299_v52 }
   0xf   :  { %197 = vmatpush.msra.mxu2 %v1203_v20  ;;  %248 = vmatpush.msra.mxu3 %v1175_v11  ;;  %1646 = vst [vmem:[#allocation5_spill] sm:$0xff] %v1312_v56  ;;  %v1334_v63 = vand.u32 4294901760, %v24_v55  ;;  %v1337_v0 = vsub.f32 %v26_v42, %v1296_v51  ;;  %v1342_v2 = vand.u32 4294901760, %v121_v53  ;;  %v1345_v6 = vsub.f32 %v25_v47, %v1303_v54 }
  0x10   :  { %99 = vmatpush.msra.mxu1 %v1273_v43  ;;  %54 = vmatpush.msra.mxu0 %v1193_v17  ;;  %1647 = vst [vmem:[#allocation6_spill] sm:$0xff] %v1320_v59  ;;  %v133_v8 = vsub.f32 %v1280_v46, %v1315_v57  ;;  %v1359_v12 = vand.u32 4294901760, %v1318_v58  ;;  %v1361_v13 = vand.u32 4294901760, %v23_v60  ;;  %v1364_v18 = vand.u32 4294901760, %v1352_v7 }
  0x11   :  { %200 = vmatpush.msra.mxu2 %v1206_v21  ;;  %250 = vmatpush.msra.mxu3 %v1193_v17  ;;  %1648 = vst [vmem:[#allocation7_spill] sm:$0xff] %v1342_v2  ;;  %v1366_v26 = vand.u32 4294901760, %v22_v1  ;;  %v1372_v30 = vand.u32 4294901760, %v127_v61  ;;  %v139_v31 = vsub.f32 %v1299_v52, %v1332_v62  ;;  %v1377_v32 = vand.u32 4294901760, %v1337_v0 }
  0x12   :  { %105 = vmatpush.msra.mxu1 %v1291_v49  ;;  %56 = vmatpush.msra.mxu0 %v1218_v25  ;;  %v1380_v36 = vsub.f32 %v24_v55, %v1334_v63  ;;  %v1383_v39 = vand.u32 4294901760, %v1345_v6  ;;  %v1389_v42 = vand.u32 4294901760, %v133_v8  ;;  %v145_v44 = vsub.f32 %v1318_v58, %v1359_v12 }
  0x13   :  { %203 = vmatpush.msra.mxu2 %v1230_v29  ;;  %252 = vmatpush.msra.mxu3 %v1218_v25  ;;  %1650 = vst [vmem:[#allocation9_spill] sm:$0xff] %v1372_v30  ;;  %v1394_v47 = vsub.f32 %v23_v60, %v1361_v13  ;;  %v74_v48 = vsub.f32 %v1352_v7, %v1364_v18  ;;  %v1402_v53 = vand.u32 4294901760, %v139_v31  ;;  %vm387_vm0 = vcmask 1043456  }
  0x14   :  { %111 = vmatpush.msra.mxu1 %v1312_v56  ;;  %58 = vmatpush.msra.mxu0 %v1227_v28  ;;  %1651 = vst [vmem:[#allocation10_spill] sm:$0xff] %v1389_v42  ;;  %v151_v55 = vsub.f32 %v1337_v0, %v1377_v32  ;;  %v1407_v61 = vand.u32 4294901760, %v1380_v36  ;;  %v1410_v60 = vsub.f32 %v22_v1, %v1366_v26  ;;  %v1416_v8 = vand.u32 4294901760, %v145_v44 }
  0x15   :  { %206 = vmatpush.msra.mxu2 %v1261_v40  ;;  %254 = vmatpush.msra.mxu3 %v1227_v28  ;;  %1652 = vst [vmem:[#allocation11_spill] sm:$0xff] %v1402_v53  ;;  %v157_v31 = vsub.f32 %v1345_v6, %v1383_v39  ;;  %v1421_v7 = vand.u32 4294901760, %v1394_v47  ;;  %vm383_vm1 = vcmask 31744  }
  0x16   :  { %117 = vmatpush.msra.mxu1 %v1320_v59  ;;  %60 = vmatpush.msra.mxu0 %v1247_v35  ;;  %1653 = vst [vmem:[#allocation12_spill] sm:$0xff] %v1416_v8  ;;  %v1427_v1 = vand.u32 4294901760, %v151_v55  ;;  %v163_v44 = vsub.f32 %v1380_v36, %v1407_v61 }
  0x17   :  { %209 = vmatpush.msra.mxu2 %v1280_v46  ;;  %256 = vmatpush.msra.mxu3 %v1247_v35  ;;  %v169_v55 = vsub.f32 %v1394_v47, %v1421_v7 }
  0x18   :  { %123 = vmatpush.msra.mxu1 %v1342_v2  ;;  %62 = vmatpush.msra.mxu0 %v1277_v45  ;;  %v1438_v2 = vand.u32 4294901760, %v157_v31  ;;  %v1446_v59 = vand.u32 4294901760, %v163_v44 }
  0x19   :  { %212 = vmatpush.msra.mxu2 %v1299_v52  ;;  %258 = vmatpush.msra.mxu3 %v1277_v45  ;;  %v1453_v31 = vand.u32 4294901760, %v169_v55 }
  0x1a   :  { %129 = vmatpush.msra.mxu1 %v1372_v30  ;;  %64 = vmatpush.msra.mxu0 %v1296_v51  ;;  %v75_v30 = vand.u32 4294901760, %v74_v48 }
  0x1b   :  { %215 = vmatpush.msra.mxu2 %v1318_v58  ;;  %260 = vmatpush.msra.mxu3 %v1296_v51 }
  0x1c   :  { %135 = vmatpush.msra.mxu1 %v1389_v42  ;;  %66 = vmatpush.msra.mxu0 %v1303_v54  ;;  %v1432_v42 = vand.u32 4294901760, %v1410_v60 }
  0x1d   :  { %218 = vmatpush.msra.mxu2 %v1337_v0  ;;  %262 = vmatpush.msra.mxu3 %v1303_v54 }
  0x1e   :  { %141 = vmatpush.msra.mxu1 %v1402_v53  ;;  %68 = vmatpush.msra.mxu0 %v1334_v63  ;;  %v76_v53 = vsub.f32 %v74_v48, %v75_v30 }
  0x1f   :  { %221 = vmatpush.msra.mxu2 %v1345_v6  ;;  %264 = vmatpush.msra.mxu3 %v1334_v63 }
  0x20   :  { %147 = vmatpush.msra.mxu1 %v1416_v8  ;;  %70 = vmatpush.msra.mxu0 %v1361_v13  ;;  %v175_v8 = vsub.f32 %v1410_v60, %v1432_v42  ;;  %v77_v56 = vand.u32 4294901760, %v76_v53 }
  0x21   :  { %224 = vmatpush.msra.mxu2 %v1380_v36  ;;  %266 = vmatpush.msra.mxu3 %v1361_v13 }
  0x22   :  { %153 = vmatpush.msra.mxu1 %v1427_v1  ;;  %72 = vmatpush.msra.mxu0 %v1366_v26  ;;  %v1459_v44 = vand.u32 4294901760, %v175_v8 }
  0x23   :  { %227 = vmatpush.msra.mxu2 %v1394_v47  ;;  %268 = vmatpush.msra.mxu3 %v1366_v26 }
  0x24   :  { %279 = vmatpush.msrb.mxu0 %v1210_v22  ;;  %159 = vmatpush.msra.mxu1 %v1438_v2 }
  0x25   :  { %230 = vmatpush.msra.mxu2 %v1410_v60  ;;  %272 = vmatmul.f32.vlgmr.msra.gmra.mxu3 %v75_v30 }
  0x26   :  { %283 = vmatpush.msrb.mxu0 %v1213_v23  ;;  %165 = vmatpush.msra.mxu1 %v1446_v59 }
  0x27   :  { %233 = vmatmul.f32.vlgmr.msra.gmra.mxu2 %v74_v48  ;;  %78 = vmatmul.f32.vlgmr.msra.gmra.mxu0 %v77_v56 }
  0x28   :  { %287 = vmatpush.msrb.mxu0 %v1216_v24  ;;  %171 = vmatpush.msra.mxu1 %v1453_v31 }
  0x2a   :  { %291 = vmatpush.msrb.mxu0 %v1225_v27  ;;  %177 = vmatpush.msra.mxu1 %v1459_v44 }
  0x2b   :  { %179 = vmatmul.f32.vlgmr.msra.gmra.mxu1 %v1364_v18 }
  0x2c   :  { %346 = vmatpush.msrb.mxu1 %v1156_v3  ;;  %295 = vmatpush.msrb.mxu0 %v1241_v33 }
  0x2e   :  { %348 = vmatpush.msrb.mxu1 %v1158_v4  ;;  %299 = vmatpush.msrb.mxu0 %v1245_v34 }
  0x30   :  { %350 = vmatpush.msrb.mxu1 %v1160_v5  ;;  %303 = vmatpush.msrb.mxu0 %v1265_v41 }
  0x32   :  { %352 = vmatpush.msrb.mxu1 %v1171_v9  ;;  %307 = vmatpush.msrb.mxu0 %v1294_v50 }
  0x34   :  { %354 = vmatpush.msrb.mxu1 %v1173_v10  ;;  %311 = vmatpush.msrb.mxu0 %v1315_v57 }
  0x36   :  { %356 = vmatpush.msrb.mxu1 %v1175_v11  ;;  %315 = vmatpush.msrb.mxu0 %v1332_v62 }
  0x38   :  { %358 = vmatpush.msrb.mxu1 %v1193_v17  ;;  %319 = vmatpush.msrb.mxu0 %v1359_v12 }
  0x3a   :  { %360 = vmatpush.msrb.mxu1 %v1218_v25  ;;  %323 = vmatpush.msrb.mxu0 %v1377_v32 }
  0x3c   :  { %362 = vmatpush.msrb.mxu1 %v1227_v28  ;;  %327 = vmatpush.msrb.mxu0 %v1383_v39 }
  0x3e   :  { %364 = vmatpush.msrb.mxu1 %v1247_v35  ;;  %331 = vmatpush.msrb.mxu0 %v1407_v61 }
  0x40   :  { %366 = vmatpush.msrb.mxu1 %v1277_v45  ;;  %335 = vmatpush.msrb.mxu0 %v1421_v7 }
  0x42   :  { %368 = vmatpush.msrb.mxu1 %v1296_v51  ;;  %339 = vmatpush.msrb.mxu0 %v1432_v42 }
  0x43   :  { %341 = vmatmul.f32.vlgmr.msrb.gmra.mxu0 %v1364_v18 }
  0x44   :  { %370 = vmatpush.msrb.mxu1 %v1303_v54  ;;  %683 = vmatpush.msra.mxu0 %v1185_v14  ;;  %v38_v14 = vld [vmem:[%s1636_s4] sm:$0xf] }
  0x46   :  { %372 = vmatpush.msrb.mxu1 %v1334_v63  ;;  %686 = vmatpush.msra.mxu0 %v1188_v15  ;;  %v389_v15 = vsel %vm387_vm0, %v38_v14, 0 }
  0x48   :  { %374 = vmatpush.msrb.mxu1 %v1361_v13  ;;  %689 = vmatpush.msra.mxu0 %v1191_v16  ;;  %v1531_v16 = vand.u32 4294901760, %v389_v15 }
  0x4a   :  { %376 = vmatpush.msrb.mxu1 %v1366_v26  ;;  %692 = vmatpush.msra.mxu0 %v1200_v19  ;;  %v1534_v19 = vsub.f32 %v389_v15, %v1531_v16 }
  0x4b   :  { %378 = vmatmul.f32.vlgmr.msrb.gmra.mxu1 %v1364_v18  ;;  %407 = vmatpush.msrb.mxu2 %v1531_v16 }
  0x4c   :  { %736 = vmatpush.msra.mxu1 %v1156_v3  ;;  %695 = vmatpush.msra.mxu0 %v1203_v20  ;;  %v1539_v20 = vand.u32 4294901760, %v1534_v19 }
  0x4d   :  { %460 = vmatpush.msra.mxu2 %v1534_v19 }
  0x4e   :  { %738 = vmatpush.msra.mxu1 %v1158_v4  ;;  %698 = vmatpush.msra.mxu0 %v1206_v21  ;;  %v435_v21 = vsub.f32 %v1534_v19, %v1539_v20 }
  0x50   :  { %740 = vmatpush.msra.mxu1 %v1160_v5  ;;  %701 = vmatpush.msra.mxu0 %v1230_v29  ;;  %v436_v29 = vand.u32 4294901760, %v435_v21  ;;  %v1654_v21 = vld [vmem:[#allocation5_spill] sm:$0xff] }
  0x52   :  { %742 = vmatpush.msra.mxu1 %v1171_v9  ;;  %704 = vmatpush.msra.mxu0 %v1261_v40 }
  0x53   :  { %437 = vmatpush.msrb.mxu3 %v436_v29 }
  0x54   :  { %744 = vmatpush.msra.mxu1 %v1173_v10  ;;  %707 = vmatpush.msra.mxu0 %v1280_v46 }
  0x55   :  { %483 = vmatpush.msra.mxu3 %v1531_v16 }
  0x56   :  { %746 = vmatpush.msra.mxu1 %v1175_v11  ;;  %710 = vmatpush.msra.mxu0 %v1299_v52 }
  0x58   :  { %748 = vmatpush.msra.mxu1 %v1193_v17  ;;  %713 = vmatpush.msra.mxu0 %v1318_v58 }
  0x5a   :  { %750 = vmatpush.msra.mxu1 %v1218_v25  ;;  %716 = vmatpush.msra.mxu0 %v1337_v0 }
  0x5c   :  { %752 = vmatpush.msra.mxu1 %v1227_v28  ;;  %719 = vmatpush.msra.mxu0 %v1345_v6 }
  0x5e   :  { %754 = vmatpush.msra.mxu1 %v1247_v35  ;;  %722 = vmatpush.msra.mxu0 %v1380_v36 }
  0x60   :  { %756 = vmatpush.msra.mxu1 %v1277_v45  ;;  %725 = vmatpush.msra.mxu0 %v1394_v47 }
  0x62   :  { %758 = vmatpush.msra.mxu1 %v1296_v51  ;;  %728 = vmatpush.msra.mxu0 %v1410_v60 }
  0x64   :  { %760 = vmatpush.msra.mxu1 %v1303_v54  ;;  %927 = vmatpush.msrb.mxu0 %v1531_v16 }
  0x66   :  { %762 = vmatpush.msra.mxu1 %v1334_v63 }
  0x68   :  { %764 = vmatpush.msra.mxu1 %v1361_v13 }
  0x6a   :  { %766 = vmatpush.msra.mxu1 %v1366_v26 }
  0x6c   :  { %957 = vmatpush.msrb.mxu1 %v436_v29  ;;  %v1655_v29 = vld [vmem:[#allocation6_spill] sm:$0xff] }
  0xa4   :  { %v79_v46 = vpop.f32.mrf.mxu0 }
  0xa8   :  { %v180_v40 = vpop.f32.mrf.mxu1  ;;  %v273_v0 = vpop.f32.mrf.mxu3 }
  0xa9   :  { %v181_v52 = vadd.f32 %v180_v40, %v79_v46  ;;  %v1656_v40 = vld [vmem:[#allocation7_spill] sm:$0xff] }
  0xaa   :  { %v234_v56 = vpop.f32.mrf.mxu2 }
  0xab   :  { %v235_v58 = vadd.f32 %v234_v56, %v181_v52 }
  0xad   :  { %v274_v6 = vadd.f32 %v273_v0, %v235_v58 }
  0xc0   :  { %v342_v18 = vpop.f32.mrf.mxu0 }
  0xc1   :  { %v343_v30 = vadd.f32 %v342_v18, %v274_v6 }
  0xc8   :  { %v379_v36 = vpop.f32.mrf.mxu1 }
  0xc9   :  { %v380_v47 = vadd.f32 %v379_v36, %v343_v30 }
  0xcb   :  { %v382_v48 = vmul.f32 0.03125, %v380_v47 }
  0xcd   :  { %v385_v53 = vsel %vm383_vm1, %v382_v48, 0 }
  0xce   :  { %v408_v60 = vand.u32 4294901760, %v385_v53 }
  0xd0   :  { %v409_v8 = vsub.f32 %v385_v53, %v408_v60  ;;  %439 = vmatmul.f32.vlgmr.msrb.gmra.mxu3 %v408_v60 }
  0xd1   :  { %531 = vmatpush.msrb.mxu3 %v1531_v16 }
  0xd2   :  { %v410_v55 = vand.u32 4294901760, %v409_v8 }
  0xd4   :  { %v411_v14 = vsub.f32 %v409_v8, %v410_v55 }
  0xd6   :  { %v412_v15 = vand.u32 4294901760, %v411_v14 }
  0xd8   :  { %413 = vmatmul.f32.vlgmr.msrb.gmra.mxu2 %v412_v15  ;;  %487 = vmatmul.f32.vlgmr.msra.gmra.mxu3 %v410_v55 }
  0xd9   :  { %509 = vmatpush.msrb.mxu2 %v1539_v20  ;;  %585 = vmatpush.msra.mxu3 %v1253_v37  ;;  %v1657_v37 = vld [vmem:[#allocation9_spill] sm:$0xff] }
  0xdb   :  { %591 = vmatpush.msra.mxu3 %v1256_v38  ;;  %v1658_v38 = vld [vmem:[#allocation10_spill] sm:$0xff] }
  0xdd   :  { %597 = vmatpush.msra.mxu3 %v1273_v43  ;;  %v1659_v43 = vld [vmem:[#allocation11_spill] sm:$0xff] }
  0xdf   :  { %603 = vmatpush.msra.mxu3 %v1291_v49  ;;  %v1660_v49 = vld [vmem:[#allocation12_spill] sm:$0xff] }
  0xe0   :  { %463 = vmatmul.f32.vlgmr.msra.gmra.mxu2 %v409_v8  ;;  %533 = vmatmul.f32.vlgmr.msrb.gmra.mxu3 %v408_v60 }
  0xe1   :  { %540 = vmatpush.msra.mxu2 %v1156_v3  ;;  %609 = vmatpush.msra.mxu3 %v1654_v21 }
  0xe3   :  { %542 = vmatpush.msra.mxu2 %v1158_v4  ;;  %615 = vmatpush.msra.mxu3 %v1655_v29 }
  0xe5   :  { %544 = vmatpush.msra.mxu2 %v1160_v5  ;;  %621 = vmatpush.msra.mxu3 %v1656_v40 }
  0xe7   :  { %546 = vmatpush.msra.mxu2 %v1171_v9  ;;  %627 = vmatpush.msra.mxu3 %v1657_v37 }
  0xe8   :  { %511 = vmatmul.f32.vlgmr.msrb.gmra.mxu2 %v408_v60 }
  0xe9   :  { %548 = vmatpush.msra.mxu2 %v1173_v10  ;;  %633 = vmatpush.msra.mxu3 %v1658_v38 }
  0xeb   :  { %550 = vmatpush.msra.mxu2 %v1175_v11  ;;  %639 = vmatpush.msra.mxu3 %v1659_v43 }
  0xed   :  { %552 = vmatpush.msra.mxu2 %v1193_v17  ;;  %645 = vmatpush.msra.mxu3 %v1660_v49 }
  0xef   :  { %554 = vmatpush.msra.mxu2 %v1218_v25  ;;  %651 = vmatpush.msra.mxu3 %v1427_v1 }
  0xf1   :  { %556 = vmatpush.msra.mxu2 %v1227_v28  ;;  %657 = vmatpush.msra.mxu3 %v1438_v2 }
  0xf3   :  { %558 = vmatpush.msra.mxu2 %v1247_v35  ;;  %663 = vmatpush.msra.mxu3 %v1446_v59 }
  0xf5   :  { %560 = vmatpush.msra.mxu2 %v1277_v45  ;;  %669 = vmatpush.msra.mxu3 %v1453_v31 }
  0xf7   :  { %562 = vmatpush.msra.mxu2 %v1296_v51  ;;  %675 = vmatpush.msra.mxu3 %v1459_v44 }
  0xf9   :  { %844 = vmatpush.msrb.mxu3 %v1156_v3  ;;  %564 = vmatpush.msra.mxu2 %v1303_v54 }
  0xfb   :  { %846 = vmatpush.msrb.mxu3 %v1158_v4  ;;  %566 = vmatpush.msra.mxu2 %v1334_v63 }
  0xfd   :  { %848 = vmatpush.msrb.mxu3 %v1160_v5  ;;  %568 = vmatpush.msra.mxu2 %v1361_v13 }
  0xff   :  { %850 = vmatpush.msrb.mxu3 %v1171_v9  ;;  %570 = vmatpush.msra.mxu2 %v1366_v26 }
 0x101   :  { %777 = vmatpush.msrb.mxu2 %v1210_v22  ;;  %852 = vmatpush.msrb.mxu3 %v1173_v10 }
 0x103   :  { %781 = vmatpush.msrb.mxu2 %v1213_v23  ;;  %854 = vmatpush.msrb.mxu3 %v1175_v11 }
 0x105   :  { %785 = vmatpush.msrb.mxu2 %v1216_v24  ;;  %856 = vmatpush.msrb.mxu3 %v1193_v17 }
 0x107   :  { %789 = vmatpush.msrb.mxu2 %v1225_v27  ;;  %858 = vmatpush.msrb.mxu3 %v1218_v25  ;;  %v1661_v27 = vld [vmem:[#allocation8_spill] sm:$0xff] }
 0x109   :  { %793 = vmatpush.msrb.mxu2 %v1241_v33  ;;  %860 = vmatpush.msrb.mxu3 %v1227_v28 }
 0x10b   :  { %797 = vmatpush.msrb.mxu2 %v1245_v34  ;;  %862 = vmatpush.msrb.mxu3 %v1247_v35 }
 0x10d   :  { %801 = vmatpush.msrb.mxu2 %v1265_v41  ;;  %864 = vmatpush.msrb.mxu3 %v1277_v45 }
 0x10f   :  { %805 = vmatpush.msrb.mxu2 %v1294_v50  ;;  %866 = vmatpush.msrb.mxu3 %v1296_v51 }
 0x111   :  { %809 = vmatpush.msrb.mxu2 %v1315_v57  ;;  %868 = vmatpush.msrb.mxu3 %v1303_v54 }
 0x113   :  { %813 = vmatpush.msrb.mxu2 %v1332_v62  ;;  %870 = vmatpush.msrb.mxu3 %v1334_v63 }
 0x115   :  { %817 = vmatpush.msrb.mxu2 %v1359_v12  ;;  %872 = vmatpush.msrb.mxu3 %v1361_v13 }
 0x117   :  { %821 = vmatpush.msrb.mxu2 %v1377_v32  ;;  %874 = vmatpush.msrb.mxu3 %v1366_v26 }
 0x119   :  { %825 = vmatpush.msrb.mxu2 %v1383_v39 }
 0x11b   :  { %829 = vmatpush.msrb.mxu2 %v1407_v61 }
 0x11d   :  { %833 = vmatpush.msrb.mxu2 %v1421_v7 }
 0x11f   :  { %837 = vmatpush.msrb.mxu2 %v1432_v42 }
 0x153   :  { %v440_v3 = vpop.f32.mrf.mxu3 }
 0x15b   :  { %v414_v4 = vpop.f32.mrf.mxu2  ;;  %v488_v5 = vpop.f32.mrf.mxu3 }
 0x15c   :  { %v441_v10 = vadd.f32 %v440_v3, %v414_v4 }
 0x163   :  { %v464_v9 = vpop.f32.mrf.mxu2  ;;  %v534_v24 = vpop.f32.mrf.mxu3 }
 0x164   :  { %v465_v11 = vadd.f32 %v464_v9, %v441_v10 }
 0x166   :  { %v489_v17 = vadd.f32 %v488_v5, %v465_v11 }
 0x16b   :  { %v512_v22 = vpop.f32.mrf.mxu2 }
 0x16c   :  { %v513_v23 = vadd.f32 %v512_v22, %v489_v17  ;;  %v1084_v17 = vld [vmem:[%s1633_s1] ss:$0 sm:$0xff] }
 0x16d   :  { %v1085_v22 = vld [vmem:[%s1634_s2] ss:$0 sm:$0xff] }
 0x16e   :  { %v535_v25 = vadd.f32 %v534_v24, %v513_v23 }
 0x170   :  { %v1613_v28 = vsub.f32 %v1661_v27, %v535_v25 }
 0x172   :  { %v538_v33 = vmul.f32 %v1613_v28, %v1613_v28 }
 0x174   :  { %v571_v34 = vand.u32 4294901760, %v538_v33 }
 0x176   :  { %677 = vmatmul.f32.vlgmr.msra.gmra.mxu3 %v571_v34  ;;  %v572_v35 = vsub.f32 %v538_v33, %v571_v34 }
 0x178   :  { %731 = vmatmul.f32.vlgmr.msra.gmra.mxu0 %v572_v35  ;;  %v573_v41 = vand.u32 4294901760, %v572_v35 }
 0x179   :  { %980 = vmatpush.msra.mxu0 %v1534_v19 }
 0x17a   :  { %770 = vmatmul.f32.vlgmr.msra.gmra.mxu1 %v573_v41  ;;  %v574_v45 = vsub.f32 %v572_v35, %v573_v41 }
 0x17b   :  { %1003 = vmatpush.msra.mxu1 %v1531_v16 }
 0x17c   :  { %v575_v50 = vand.u32 4294901760, %v574_v45 }
 0x17e   :  { %576 = vmatmul.f32.vlgmr.msra.gmra.mxu2 %v575_v50  ;;  %876 = vmatmul.f32.vlgmr.msrb.gmra.mxu3 %v571_v34 }
 0x186   :  { %839 = vmatmul.f32.vlgmr.msrb.gmra.mxu2 %v571_v34 }
 0x1f5   :  { %v732_v59 = vpop.f32.mrf.mxu0 }
 0x1f7   :  { %v771_v63 = vpop.f32.mrf.mxu1 }
 0x1f9   :  { %v678_v51 = vpop.f32.mrf.mxu3 }
 0x201   :  { %v577_v54 = vpop.f32.mrf.mxu2  ;;  %v877_v13 = vpop.f32.mrf.mxu3 }
 0x202   :  { %v679_v57 = vadd.f32 %v678_v51, %v577_v54 }
 0x204   :  { %v733_v62 = vadd.f32 %v732_v59, %v679_v57 }
 0x206   :  { %v772_v2 = vadd.f32 %v771_v63, %v733_v62 }
 0x209   :  { %v840_v7 = vpop.f32.mrf.mxu2 }
 0x20a   :  { %v841_v12 = vadd.f32 %v840_v7, %v772_v2 }
 0x20c   :  { %v878_v26 = vadd.f32 %v877_v13, %v841_v12 }
 0x20e   :  { %v880_v32 = vmul.f32 0.032258064, %v878_v26 }
 0x210   :  { %1086 = vrsqrt.f32 %v880_v32  ;;  %vm888_vm2 = vcmp.eq.f32.partialorder %v880_v32, inf  ;;  %v891_v46 = vand.u32 2147483648, %v880_v32  ;;  %vm890_vm3 = vcmp.eq.f32.partialorder %v880_v32, 0.0 }
 0x216   :  { %v1087_v39 = vpop.eup %1086 }
 0x217   :  { %v882_v42 = vmul.f32 %v1087_v39, %v880_v32 }
 0x219   :  { %v883_v61 = vmul.f32 %v1087_v39, %v882_v42 }
 0x21b   :  { %v884_v1 = vmul.f32 0.5, %v883_v61 }
 0x21d   :  { %v885_v31 = vsub.f32 1.5, %v884_v1 }
 0x21f   :  { %v886_v44 = vmul.f32 %v1087_v39, %v885_v31 }
 0x221   :  { %v887_v19 = vmul.f32 %v886_v44, %v880_v32 }
 0x223   :  { %v889_v52 = vsel %vm888_vm2, %v880_v32, %v887_v19 }
 0x224   :  { %v892_v56 = vsel %vm890_vm3, %v891_v46, %v889_v52 }
 0x225   :  { %v893_v58 = vadd.f32 1e-06, %v892_v56 }
 0x227   :  { %1088 = vrcp.f32 %v893_v58  ;;  %v905_v30 = vand.u32 2147483648, %v893_v58  ;;  %v903_v47 = vand.u32 2147483647, %v893_v58  ;;  %vm899_vm5 = vweird.f32 %v893_v58 }
 0x229   :  { %v906_v53 = vor.u32 1.1754944e-38, %v905_v30  ;;  %vm904_vm7 = vcmp.eq.f32.partialorder %v903_v47, 8.507059e+37 }
 0x22d   :  { %v1089_v0 = vpop.eup %1088 }
 0x22e   :  { %v895_v6 = vmul.f32 %v1089_v0, %v893_v58  ;;  %vm900_vm4 = vweird.f32 %v1089_v0 }
 0x22f   :  { %vm901_vm6 = vmor %vm899_vm5, %vm900_vm4 }
 0x230   :  { %v896_v18 = vsub.f32 1.0, %v895_v6 }
 0x232   :  { %v897_v36 = vmul.f32 %v1089_v0, %v896_v18 }
 0x234   :  { %v898_v48 = vadd.f32 %v1089_v0, %v897_v36 }
 0x236   :  { %v902_v60 = vsel %vm901_vm6, %v1089_v0, %v898_v48 }
 0x237   :  { %v907_v8 = vsel %vm904_vm7, %v906_v53, %v902_v60 }
 0x238   :  { %v909_v55 = vsel %vm383_vm1, %v907_v8, 0 }
 0x239   :  { %v928_v14 = vand.u32 4294901760, %v909_v55 }
 0x23b   :  { %v929_v15 = vsub.f32 %v909_v55, %v928_v14  ;;  %959 = vmatmul.f32.vlgmr.msrb.gmra.mxu1 %v928_v14 }
 0x23c   :  { %1051 = vmatpush.msrb.mxu1 %v1531_v16 }
 0x23d   :  { %v930_v21 = vand.u32 4294901760, %v929_v15 }
 0x23f   :  { %v931_v29 = vsub.f32 %v929_v15, %v930_v21 }
 0x241   :  { %v932_v40 = vand.u32 4294901760, %v931_v29 }
 0x243   :  { %933 = vmatmul.f32.vlgmr.msrb.gmra.mxu0 %v932_v40  ;;  %1007 = vmatmul.f32.vlgmr.msra.gmra.mxu1 %v930_v21 }
 0x244   :  { %1029 = vmatpush.msrb.mxu0 %v1539_v20 }
 0x24b   :  { %983 = vmatmul.f32.vlgmr.msra.gmra.mxu0 %v929_v15  ;;  %1053 = vmatmul.f32.vlgmr.msrb.gmra.mxu1 %v928_v14 }
 0x253   :  { %1031 = vmatmul.f32.vlgmr.msrb.gmra.mxu0 %v928_v14 }
 0x2b8   :  { %v960_v37 = vpop.f32.mrf.mxu1 }
 0x2c0   :  { %v934_v38 = vpop.f32.mrf.mxu0  ;;  %v1008_v43 = vpop.f32.mrf.mxu1 }
 0x2c1   :  { %v961_v3 = vadd.f32 %v960_v37, %v934_v38 }
 0x2c8   :  { %v984_v49 = vpop.f32.mrf.mxu0  ;;  %v1054_v16 = vpop.f32.mrf.mxu1 }
 0x2c9   :  { %v985_v4 = vadd.f32 %v984_v49, %v961_v3 }
 0x2cb   :  { %v1009_v5 = vadd.f32 %v1008_v43, %v985_v4 }
 0x2d0   :  { %v1032_v9 = vpop.f32.mrf.mxu0 }
 0x2d1   :  { %v1033_v10 = vadd.f32 %v1032_v9, %v1009_v5 }
 0x2d3   :  { %v1055_v11 = vadd.f32 %v1054_v16, %v1033_v10 }
 0x2d5   :  { %v1057_v20 = vmul.f32 %v1055_v11, %v1613_v28 }
 0x2d7   :  { %v1061_v23 = vmul.f32 %v1084_v17, %v1057_v20 }
 0x2d9   :  { %v1065_v24 = vadd.f32 %v1085_v22, %v1061_v23 }
 0x2db   :  { %1066 = vst [vmem:[#allocation2] sm:$0xf] %v1065_v24 }
 0x2dc   :  { %1077 = dma.vmem_to_hbm [thread:$0]  %s1073_s6, 64, %s1075_s9, [#allocation3]  }
 0x2dd   :  { %1114 = dma.done.wait [#allocation3], 64  }
 0x2de   :  { %1115 = vsyncadd [#allocation3], 4294967232 }
 0x2df   :  { %1082 = vsyncpa [#allocation3], 1 }

</bundles_post_ra>
